<compile_context>
chip_gen: v7x
topology: tpu7x:2x2x1
jax: 0.10.0
libtpu: 0.0.40
codegen_flags: <defaults>
</compile_context>

<pallas_src>
import jax
import jax.numpy as jnp
from jax.experimental import pallas as pl
from jax.experimental.pallas import tpu as pltpu


def mlp_kernel(xT_ref, w1_ref, b1_ref, w2_ref, b2_ref, w3_ref, b3_ref, oT_ref):
    # Layer 1: (32,4) @ (4,TB) + (32,1) -> ReLU
    h = jnp.dot(w1_ref[...], xT_ref[...], preferred_element_type=jnp.float32)
    h = jnp.maximum(h + b1_ref[...], 0.0)
    # Layer 2: (16,32) @ (32,TB) + (16,1) -> ReLU
    h = jnp.dot(w2_ref[...], h, preferred_element_type=jnp.float32)
    h = jnp.maximum(h + b2_ref[...], 0.0)
    # Layer 3: (3,16) @ (16,TB) + (3,1) -> ReLU (spec applies ReLU after fc3)
    h = jnp.dot(w3_ref[...], h, preferred_element_type=jnp.float32)
    h = jnp.maximum(h + b3_ref[...], 0.0)
    oT_ref[...] = h.astype(oT_ref.dtype)


def _round_up(n, m):
    return ((n + m - 1) // m) * m


# Max tile kept such that per-step VMEM (~0.3 KB * TB) fits v5e's 16 MiB scoped
# default without needing a vmem_limit_bytes override.
_MAX_TB = 32768


def mlp_forward_featmajor(xT, params, *, tb=_MAX_TB):
    """Fused MLP on feature-major input.

    xT: (4, B) float32 (batch on the lane axis).  Returns (3, B) float32.
    """
    d_in, B = xT.shape
    assert d_in == 4, d_in
    w1, b1 = params["w1"], params["b1"]   # (32, 4), (32, 1)
    w2, b2 = params["w2"], params["b2"]   # (16, 32), (16, 1)
    w3, b3 = params["w3"], params["b3"]   # (3, 16), (3, 1)

    # Pad batch only to a multiple of 128 (lane granularity); the ragged last
    # grid block (if any) is masked by Pallas.
    b_pad = _round_up(B, 128)
    if b_pad != B:
        xT = jnp.pad(xT, ((0, 0), (0, b_pad - B)))

    # Tile size: multiple of 128, capped for scoped VMEM, no bigger than the
    # (padded) batch, and split in two when possible so both TensorCores on
    # dual-core chips (v7x) get work under dimension_semantics=("parallel",).
    tb_eff = min(_round_up(max(int(tb), 128), 128), _MAX_TB)
    tb_eff = min(tb_eff, b_pad)
    if b_pad >= 256:
        half = _round_up(-(-b_pad // 2), 128)
        tb_eff = min(tb_eff, half)

    n_steps = pl.cdiv(b_pad, tb_eff)
    resident = lambda a: pl.BlockSpec(a.shape, lambda i: (0, 0))  # stays in VMEM

    outT = pl.pallas_call(
        mlp_kernel,
        out_shape=jax.ShapeDtypeStruct((3, b_pad), xT.dtype),
        grid=(n_steps,),
        in_specs=[
            pl.BlockSpec((4, tb_eff), lambda i: (0, i)),   # x^T batch tile
            resident(w1), resident(b1),
            resident(w2), resident(b2),
            resident(w3), resident(b3),
        ],
        out_specs=pl.BlockSpec((3, tb_eff), lambda i: (0, i)),
        compiler_params=pltpu.CompilerParams(
            dimension_semantics=("parallel",)),  # megacore sharding on v7x
    )(xT, w1, b1, w2, b2, w3, b3)

    return outT[:, :B]


def mlp_forward(x, params, *, tb=_MAX_TB):
    """Row-major adapter: x (B, 4) -> (B, 3).

    The two transposes are wrapper-side layout plumbing; prefer
    `mlp_forward_featmajor` when the surrounding graph can stay feature-major.
    """
    B, d_in = x.shape
    assert d_in == 4, d_in
    outT = mlp_forward_featmajor(x.T, params, tb=tb)
    return outT.T


def init_params(key):
    """Deterministic params matching nn.Linear (W: (out,in), b: (out,1))."""
    dims = [(4, 32), (32, 16), (16, 3)]
    keys = jax.random.split(key, 2 * len(dims))
    params = {}
    for idx, (fan_in, fan_out) in enumerate(dims):
        bound = 1.0 / jnp.sqrt(fan_in)
        w = jax.random.uniform(keys[2 * idx], (fan_out, fan_in),
                               minval=-bound, maxval=bound, dtype=jnp.float32)
        b = jax.random.uniform(keys[2 * idx + 1], (fan_out, 1),
                               minval=-bound, maxval=bound, dtype=jnp.float32)
        params[f"w{idx + 1}"] = w
        params[f"b{idx + 1}"] = b
    return params


def mlp_reference(x, params):
    h = jnp.maximum(x @ params["w1"].T + params["b1"].T, 0.0)
    h = jnp.maximum(h @ params["w2"].T + params["b2"].T, 0.0)
    h = jnp.maximum(h @ params["w3"].T + params["b3"].T, 0.0)
    return h


if __name__ == "__main__":
    key = jax.random.PRNGKey(0)
    pkey, xkey = jax.random.split(key)
    params = init_params(pkey)

    # Small test batch (non-multiple of 128, exercises padding + ragged block).
    x = jax.random.normal(xkey, (8, 4), dtype=jnp.float32)
    out = jax.block_until_ready(mlp_forward(x, params))
    ref = mlp_reference(x, params)
    assert out.shape == (8, 3), out.shape
    assert jnp.allclose(out, ref, atol=1e-5, rtol=1e-5), "mismatch vs reference"

    # Larger batch: >=2 grid steps (megacore path) + ragged last block.
    x_big = jax.random.normal(jax.random.PRNGKey(1), (2048 + 17, 4),
                              dtype=jnp.float32)
    out_big = jax.block_until_ready(mlp_forward(x_big, params))
    ref_big = mlp_reference(x_big, params)
    assert out_big.shape == (2048 + 17, 3), out_big.shape
    assert jnp.allclose(out_big, ref_big, atol=1e-5, rtol=1e-5), "mismatch (big batch)"

    print("KERNEL_OK")
</pallas_src>

<mosaic_0001>
module attributes {stable_mosaic.version = 11 : i64} {
  func.func @mlp_kernel(%arg0: i32, %arg1: memref<4x128xf32, #tpu.memory_space<vmem>>, %arg2: memref<32x4xf32, #tpu.memory_space<vmem>>, %arg3: memref<32x1xf32, #tpu.memory_space<vmem>>, %arg4: memref<16x32xf32, #tpu.memory_space<vmem>>, %arg5: memref<16x1xf32, #tpu.memory_space<vmem>>, %arg6: memref<3x16xf32, #tpu.memory_space<vmem>>, %arg7: memref<3x1xf32, #tpu.memory_space<vmem>>, %arg8: memref<3x128xf32, #tpu.memory_space<vmem>>) attributes {dimension_semantics = [#tpu.dimension_semantics<parallel>], iteration_bounds = array<i64: 1>, scalar_prefetch = 0 : i64, scratch_operands = 0 : i64, tpu.core_type = #tpu.core_type<tc>, window_params = [{transform_indices = @transform_0, window_bounds = array<i64: 4, 128>}, {pipeline_mode = #tpu.pipeline_mode<synchronous>, transform_indices = @transform_1, window_bounds = array<i64: 32, 4>}, {pipeline_mode = #tpu.pipeline_mode<synchronous>, transform_indices = @transform_2, window_bounds = array<i64: 32, 1>}, {pipeline_mode = #tpu.pipeline_mode<synchronous>, transform_indices = @transform_3, window_bounds = array<i64: 16, 32>}, {pipeline_mode = #tpu.pipeline_mode<synchronous>, transform_indices = @transform_4, window_bounds = array<i64: 16, 1>}, {pipeline_mode = #tpu.pipeline_mode<synchronous>, transform_indices = @transform_5, window_bounds = array<i64: 3, 16>}, {pipeline_mode = #tpu.pipeline_mode<synchronous>, transform_indices = @transform_6, window_bounds = array<i64: 3, 1>}, {transform_indices = @transform_7, window_bounds = array<i64: 3, 128>}]} {
    %c0 = arith.constant 0 : index
    %c0_0 = arith.constant 0 : index
    %0 = vector.load %arg2[%c0, %c0_0] : memref<32x4xf32, #tpu.memory_space<vmem>>, vector<32x4xf32>
    %c0_1 = arith.constant 0 : index
    %c0_2 = arith.constant 0 : index
    %1 = vector.load %arg1[%c0_1, %c0_2] : memref<4x128xf32, #tpu.memory_space<vmem>>, vector<4x128xf32>
    %cst = arith.constant dense<0.000000e+00> : vector<32x128xf32>
    %2 = tpu.matmul %0, %1, %cst {dimension_numbers = #tpu.dot_dimension_numbers<[1], [0], [0], [1], [0, 0, 1, 1], [], []>} : vector<32x4xf32>, vector<4x128xf32>, vector<32x128xf32> -> vector<32x128xf32>
    %c0_3 = arith.constant 0 : index
    %c0_4 = arith.constant 0 : index
    %3 = vector.load %arg3[%c0_3, %c0_4] : memref<32x1xf32, #tpu.memory_space<vmem>>, vector<32x1xf32>
    %4 = vector.broadcast %3 : vector<32x1xf32> to vector<32x128xf32>
    %5 = arith.addf %2, %4 : vector<32x128xf32>
    %cst_5 = arith.constant 0.000000e+00 : f32
    %6 = vector.broadcast %cst_5 : f32 to vector<32x128xf32>
    %7 = arith.maximumf %5, %6 : vector<32x128xf32>
    %c0_6 = arith.constant 0 : index
    %c0_7 = arith.constant 0 : index
    %8 = vector.load %arg4[%c0_6, %c0_7] : memref<16x32xf32, #tpu.memory_space<vmem>>, vector<16x32xf32>
    %cst_8 = arith.constant dense<0.000000e+00> : vector<16x128xf32>
    %9 = tpu.matmul %8, %7, %cst_8 {dimension_numbers = #tpu.dot_dimension_numbers<[1], [0], [0], [1], [0, 0, 1, 1], [], []>} : vector<16x32xf32>, vector<32x128xf32>, vector<16x128xf32> -> vector<16x128xf32>
    %c0_9 = arith.constant 0 : index
    %c0_10 = arith.constant 0 : index
    %10 = vector.load %arg5[%c0_9, %c0_10] : memref<16x1xf32, #tpu.memory_space<vmem>>, vector<16x1xf32>
    %11 = vector.broadcast %10 : vector<16x1xf32> to vector<16x128xf32>
    %12 = arith.addf %9, %11 : vector<16x128xf32>
    %cst_11 = arith.constant 0.000000e+00 : f32
    %13 = vector.broadcast %cst_11 : f32 to vector<16x128xf32>
    %14 = arith.maximumf %12, %13 : vector<16x128xf32>
    %c0_12 = arith.constant 0 : index
    %c0_13 = arith.constant 0 : index
    %15 = vector.load %arg6[%c0_12, %c0_13] : memref<3x16xf32, #tpu.memory_space<vmem>>, vector<3x16xf32>
    %cst_14 = arith.constant dense<0.000000e+00> : vector<3x128xf32>
    %16 = tpu.matmul %15, %14, %cst_14 {dimension_numbers = #tpu.dot_dimension_numbers<[1], [0], [0], [1], [0, 0, 1, 1], [], []>} : vector<3x16xf32>, vector<16x128xf32>, vector<3x128xf32> -> vector<3x128xf32>
    %c0_15 = arith.constant 0 : index
    %c0_16 = arith.constant 0 : index
    %17 = vector.load %arg7[%c0_15, %c0_16] : memref<3x1xf32, #tpu.memory_space<vmem>>, vector<3x1xf32>
    %18 = vector.broadcast %17 : vector<3x1xf32> to vector<3x128xf32>
    %19 = arith.addf %16, %18 : vector<3x128xf32>
    %cst_17 = arith.constant 0.000000e+00 : f32
    %20 = vector.broadcast %cst_17 : f32 to vector<3x128xf32>
    %21 = arith.maximumf %19, %20 : vector<3x128xf32>
    %c0_18 = arith.constant 0 : index
    %c0_19 = arith.constant 0 : index
    %22 = vector.load %arg8[%c0_18, %c0_19] : memref<3x128xf32, #tpu.memory_space<vmem>>, vector<3x128xf32>
    tpu.vector_store %arg8[%c0_18, %c0_19], %21 {strides = array<i32>} : memref<3x128xf32, #tpu.memory_space<vmem>>, vector<3x128xf32>,
    return
  }
  func.func @transform_0(%arg0: i32) -> (i32, i32) {
    %c0_i32 = arith.constant 0 : i32
    %c0_i32_0 = arith.constant 0 : i32
    return %c0_i32, %arg0 : i32, i32
  }
  func.func @transform_1(%arg0: i32) -> (i32, i32) {
    %c0_i32 = arith.constant 0 : i32
    %c0_i32_0 = arith.constant 0 : i32
    %c0_i32_1 = arith.constant 0 : i32
    return %c0_i32, %c0_i32_0 : i32, i32
  }
  func.func @transform_2(%arg0: i32) -> (i32, i32) {
    %c0_i32 = arith.constant 0 : i32
    %c0_i32_0 = arith.constant 0 : i32
    %c0_i32_1 = arith.constant 0 : i32
    return %c0_i32, %c0_i32_0 : i32, i32
  }
  func.func @transform_3(%arg0: i32) -> (i32, i32) {
    %c0_i32 = arith.constant 0 : i32
    %c0_i32_0 = arith.constant 0 : i32
    %c0_i32_1 = arith.constant 0 : i32
    return %c0_i32, %c0_i32_0 : i32, i32
  }
  func.func @transform_4(%arg0: i32) -> (i32, i32) {
    %c0_i32 = arith.constant 0 : i32
    %c0_i32_0 = arith.constant 0 : i32
    %c0_i32_1 = arith.constant 0 : i32
    return %c0_i32, %c0_i32_0 : i32, i32
  }
  func.func @transform_5(%arg0: i32) -> (i32, i32) {
    %c0_i32 = arith.constant 0 : i32
    %c0_i32_0 = arith.constant 0 : i32
    %c0_i32_1 = arith.constant 0 : i32
    return %c0_i32, %c0_i32_0 : i32, i32
  }
  func.func @transform_6(%arg0: i32) -> (i32, i32) {
    %c0_i32 = arith.constant 0 : i32
    %c0_i32_0 = arith.constant 0 : i32
    %c0_i32_1 = arith.constant 0 : i32
    return %c0_i32, %c0_i32_0 : i32, i32
  }
  func.func @transform_7(%arg0: i32) -> (i32, i32) {
    %c0_i32 = arith.constant 0 : i32
    %c0_i32_0 = arith.constant 0 : i32
    return %c0_i32, %arg0 : i32, i32
  }
}

</mosaic_0001>

<bundles_post_ra>
// kernel: tpu_custom_call.1
= control target key start
LH: loop header
LB: loop body
LE: loop exit
PB: predicated region body
PF: predicated region fallthrough
CT: control target
= control target key end

     0   :  { %vm69_vm0 = vcmask 1043456   ;;  %vm56_vm1 = vcmask 31744   ;;  %v447_v5 = vmov 0   ;;  %s555_s0 = inlined_call_operand.vmem [shape: f32[4,128], index: 0, kind: input, shape index: {}]   ;;  %s556_s1 = inlined_call_operand.vmem [shape: f32[32,4], index: 1, kind: input, shape index: {}]   ;;  %s557_s2 = inlined_call_operand.vmem [shape: f32[32,1], index: 2, kind: input, shape index: {}]   ;;  %s558_s3 = inlined_call_operand.vmem [shape: f32[16,32], index: 3, kind: input, shape index: {}]   ;;  %s559_s4 = inlined_call_operand.vmem [shape: f32[16,1], index: 4, kind: input, shape index: {}]   ;;  %s560_s5 = inlined_call_operand.vmem [shape: f32[3,16], index: 5, kind: input, shape index: {}]   ;;  %s561_s6 = inlined_call_operand.vmem [shape: f32[3,1], index: 6, kind: input, shape index: {}]   ;;  %s562_s7 = inlined_call_operand.hbm [shape: f32[3,128], index: 7, kind: output, shape index: {}]  }
   0x1   :  { %v31_v0 = vld [vmem:[%s555_s0] sm:$0xf]  ;;  %v28_v2 = vld [vmem:[%s556_s1 + $0x8] sm:$0xff]  ;;  %v29_v3 = vld [vmem:[%s556_s1 + $0x10] sm:$0xff]  ;;  %421 = vset.pattern.permute.xlu0 %v447_v5  ;;  %422 = vset.pattern.permute.xlu1 %v447_v5 }
   0x2   :  { %v27_v1 = vld [vmem:[%s556_s1] sm:$0xff]  ;;  %379 = vmatprep.subr.msk.mxu0 %vm69_vm0, %v31_v0  ;;  %v34_v6 = vld [vmem:[%s557_s2 + $0x10] sm:$0xff]  ;;  %v30_v7 = vld [vmem:[%s556_s1 + $0x18] sm:$0xff] }
   0x3   :  { %381 = vmatprep.mubr.msk.f32.mxu0 %vm56_vm1, %v27_v1  ;;  %v32_v4 = vld [vmem:[%s557_s2] sm:$0xff]  ;;  %380 = vmatpush3.msk.msra.mxu0 %vm69_vm0, %v31_v0  ;;  %v33_v8 = vld [vmem:[%s557_s2 + $0x8] sm:$0xff] }
   0x4   :  { %382 = vmatmul.mubr.msk.f32.vlgmr.msra.gmra.mrb[0].mxu0 %vm56_vm1, %v28_v2  ;;  %38 = vperm.xlu0 %421, %v32_v4  }
   0x5   :  { %384 = vmatprep.mubr.msk.f32.mxu0 %vm56_vm1, %v29_v3 }
   0x6   :  { %12 = vsyncpa [#allocation3], 0  ;;  %48 = vperm.xlu1 %422, %v34_v6   ;;  %v35_v9 = vld [vmem:[%s557_s2 + $0x18] sm:$0xff]  ;;  %v164_v10 = vld [vmem:[%s559_s4] sm:$0xff]  ;;  %vm176_vm2 = vcmask 261120   ;;  %v448_v33 = vmov 0.0|0.0  }
   0x7   :  { %v165_v11 = vld [vmem:[%s559_s4 + $0x8] sm:$0xff]  ;;  %v261_v12 = vld [vmem:[%s561_s6] sm:$0x7]  ;;  %413 = vmatprep.subr.bf16.mxu0 %v448_v33  ;;  %vm449_vm3 = vmmov 0   ;;  %v450_v34 = vmov 0.0   ;;  %vm267_vm4 = vcmask 130048  }
   0x8   :  { %385 = vmatmul.mubr.msk.f32.gmra.mrb[2].mxu0 %vm56_vm1, %v30_v7  ;;  %43 = vperm.xlu0 %421, %v33_v8   ;;  %v162_v13 = vld [vmem:[%s558_s3] sm:$0xff]  ;;  %v163_v32 = vld [vmem:[%s558_s3 + $0x8] sm:$0xff]  ;;  %s451_s3 = smov [#allocation2]  }
   0x9   :  { %395 = vmatprep.mubr.msk.f32.mxu1 %vm176_vm2, %v162_v13  ;;  %402 = vmatprep.mubr.msk.f32.mxu0 %vm449_vm3, %v450_v34  ;;  %v260_v44 = vld [vmem:[%s560_s5] sm:$0x7]  ;;  %s349_s26 = sshll.u32 %s451_s3, 4  ;;  %s350_s26 = int_to_ptr.vmem [resolvable:$true] %s349_s26 }
   0xa   :  { %53 = vperm.xlu1 %422, %v35_v9   ;;  %s423_s27 = scalar_lea.vmem %s350_s26, 64  ;;  %p428_p1 = scmp.lt.s32.totalorder %s350_s26, %s350_s26 }
   0xb   :  { %p424_p0 = scmp.ne.s32.totalorder %s350_s26, %s423_s27  ;;  %p429_p2 = scmp.lt.s32.totalorder %s423_s27, %s423_s27 }
   0xc   :  { %168 = vperm.xlu0 %421, %v164_v10  }
   0xd   :  { %p430_p3 = por %p429_p2, %p428_p1 }
   0xe   :  { %173 = vperm.xlu1 %422, %v165_v11  }
   0xf   :  { %p431_p4 = pnand %p430_p3, %p424_p0 }
  0x10   :  { %264 = vperm.xlu0 %421, %v261_v12  }
  0x83   :  { %v39_v14 = vpop.permute.xlu0 %38 }
  0x85   :  { %v49_v15 = vpop.permute.xlu1 %48 }
  0x87   :  { %v44_v16 = vpop.permute.xlu0 %43 }
  0x89   :  { %v54_v22 = vpop.permute.xlu1 %53 }
  0x8b   :  { %v169_v37 = vpop.permute.xlu0 %168 }
  0x8d   :  { %v174_v35 = vpop.permute.xlu1 %173 }
  0x8f   :  { %v265_v45 = vpop.permute.xlu0 %264 }
  0xd7   :  { %v383_v17 = vpop.f32.mrb[0].mxu0 }
  0xd8   :  { %v145_v18 = vadd.f32 %v383_v17, %v44_v16  ;;  %v139_v19 = vpop.f32.mrb[1].mxu0 }
  0xd9   :  { %v140_v20 = vadd.f32 %v139_v19, %v39_v14 }
  0xda   :  { %v159_v21 = vmax.f32 %v145_v18, 0.0 }
  0xdb   :  { %v158_v23 = vmax.f32 %v140_v20, 0.0  ;;  %v386_v24 = vpop.f32.mrb[2].mxu0 }
  0xdc   :  { %v155_v25 = vadd.f32 %v386_v24, %v54_v22  ;;  %v149_v26 = vpop.f32.mrb[3].mxu0 }
  0xdd   :  { %v150_v27 = vadd.f32 %v149_v26, %v49_v15  ;;  %v405_v28 = vpack.c.bf16 %v159_v21, %v158_v23 }
  0xde   :  { %v161_v29 = vmax.f32 %v155_v25, 0.0 }
  0xdf   :  { %v160_v30 = vmax.f32 %v150_v27, 0.0  ;;  %406 = vmatprep.subr.bf16.mxu1 %v405_v28 }
  0xe0   :  { %408 = vmatpush3.bf16.msra.mxu1 %v405_v28 }
  0xe1   :  { %v409_v31 = vpack.c.bf16 %v161_v29, %v160_v30 }
  0xe3   :  { %410 = vmatprep.subr.bf16.mxu1 %v409_v31 }
  0xe4   :  { %412 = vmatpush3.bf16.msra.mxu1 %v409_v31 }
  0xe7   :  { %396 = vmatmul.mubr.msk.f32.vlgmr.msra.gmra.mrb[0].mxu1 %vm176_vm2, %v163_v32 }
 0x1ba   :  { %v397_v36 = vpop.f32.mrb[0].mxu1 }
 0x1bb   :  { %v255_v38 = vadd.f32 %v397_v36, %v174_v35  ;;  %v249_v39 = vpop.f32.mrb[1].mxu1 }
 0x1bc   :  { %v250_v40 = vadd.f32 %v249_v39, %v169_v37 }
 0x1bd   :  { %v259_v41 = vmax.f32 %v255_v38, 0.0 }
 0x1be   :  { %v258_v42 = vmax.f32 %v250_v40, 0.0 }
 0x1c0   :  { %v414_v43 = vpack.c.bf16 %v259_v41, %v258_v42 }
 0x1c2   :  { %415 = vmatpush3.bf16.msra.mxu0 %v414_v43 }
 0x1c5   :  { %403 = vmatmul.mubr.msk.f32.vlgmr.msra.gmra.mrb[4].mxu0 %vm267_vm4, %v260_v44 }
 0x298   :  { %v337_v46 = vpop.f32.mrb[4].mxu0 }
 0x299   :  { %v338_v47 = vadd.f32 %v337_v46, %v265_v45  ;;  %v404_v48 = vpop.f32.mrb[5].mxu0 }
 0x29b   :  { %v341_v49 = vmax.f32 %v338_v47, 0.0 }
 0x29d   :  { %342 = vst [vmem:[#allocation2] sm:$0x7] %v341_v49 }
 0x29e   :  { %434 = shalt.err (!%p431_p4)
}
 0x29f   :  { %s435_s29 = scalar_lea.hbm %s562_s7, 64 }
 0x2a0   :  { %p436_p5 = scmp.ne.s32.totalorder %s562_s7, %s435_s29  ;;  %p439_p6 = scmp.lt.u32.totalorder %s435_s29, %s562_s7 }
 0x2a2   :  { %p441_p7 = pnand %p439_p6, %p436_p5 }
 0x2a4   :  { %444 = shalt.err (!%p441_p7)
}
 0x2a5   :  { %352 = dma.vmem_to_hbm [thread:$0]  %s350_s26, 64, %s562_s7, [#allocation3]  }
 0x2a6   :  { %445 = dma.done.wait [#allocation3], 64  }
 0x2a7   :  { %446 = vsyncadd [#allocation3], 4294967232 }
 0x2a8   :  { %356 = vsyncpa [#allocation3], 1 }

</bundles_post_ra>
